<compile_context>
chip_gen: v6e
topology: v6e:2x2x1
jax: 0.10.0
libtpu: 0.0.40
codegen_flags: <defaults>
</compile_context>

<pallas_src>
import math

import jax
import jax.numpy as jnp
from jax.experimental import pallas as pl
from jax.experimental.pallas import tpu as pltpu


def _round_up(x, m):
    return (x + m - 1) // m * m


def _round_down(x, m):
    return x // m * m


def _summer_kernel(pos_ref, invf_ref, phase_ref, x_ref, o_ref):
    """o = x + sin(pos * inv_freq + phase), broadcast over the batch dim.

    pos_ref:   (tR, 1)  f32 — base position of each row in this tile.
    invf_ref:  (1, L)   f32 — per-lane inverse frequency.
    phase_ref: (1, L)   f32 — per-lane phase (pi/2 on cos lanes; for the
                              lane-packed layout the within-row position
                              offset is folded in as off * inv_freq).
    x_ref/o_ref: (bB, tR, L) tiles of the (possibly reshaped) input/output.

    cos(x) == sin(x + pi/2): a single transcendental (EUP) per element, plus
    one VPU mul and two adds — all hidden under the HBM load/store stream.
    """
    pe = jnp.sin(pos_ref[...] * invf_ref[...] + phase_ref[...])
    o_ref[...] = x_ref[...] + pe[None].astype(o_ref.dtype)


def _pick_tiles(B, R, L, itemsize, budget_bytes=12 << 20):
    """Pick (batch_tile, row_tile) for (B, R, L)-shaped blocks.

    VMEM cost per block row = 4 * round_up(L, 128) * itemsize (2x in-buf +
    2x out-buf, lane-padded).  Sublane step is dtype-dependent to avoid
    partially packed tiles.  Prefers folding the full batch; falls back to
    batch chunking only when B * min_row_tile would not fit the budget.
    """
    sub = max(8, 32 // max(itemsize, 1))            # 8 f32, 16 bf16, 32 int8
    per_row = 4 * _round_up(L, 128) * itemsize       # per batch element
    min_rows = min(R, sub)

    rows_full_batch = budget_bytes // (per_row * B)
    if rows_full_batch >= min_rows:
        bB = B
        tR = max(sub, _round_down(rows_full_batch, sub))
        if tR >= R:
            tR = R
            # v7x has two TensorCores: keep the parallel grid >= 2 wide when
            # the whole problem would otherwise collapse to a single block.
            if R >= 2 * sub:
                tR = _round_up(pl.cdiv(R, 2), sub)
    else:
        # Even the minimum row tile with the full batch folded is too big:
        # chunk the batch instead.
        tR = min_rows
        bB = max(1, min(B, budget_bytes // (per_row * tR)))
    # NOTE: truly enormous C (per-row footprint > budget even at bB=1, tR=sub)
    # would additionally want a channel grid axis; not needed for sane shapes.
    return bB, tR


def summer(x, *, row_tile=None, batch_tile=None, budget_bytes=12 << 20):
    """tensor + PositionalEncoding1D(tensor)  (the Summer forward pass).

    x: (batch, seq, channels) float array.  Odd channel counts follow the
    reference module (frequencies built from channels rounded up to even,
    last cos channel dropped).
    """
    B, S, C = x.shape
    c_even = C + (C & 1)
    log_scale = -2.0 * math.log(10000.0) / c_even
    half_pi = math.pi / 2.0

    # Lane-dense packing: view (B, S, C) as (B, S*C/128, 128) when possible.
    packed = (C < 128) and (128 % C == 0) and (S % (128 // C) == 0)
    if packed:
        r = 128 // C                                  # positions per 128-lane row
        R, L = S // r, 128
        lane = jnp.arange(L, dtype=jnp.int32)
        ch = lane % C                                 # channel index per lane
        off = (lane // C).astype(jnp.float32)         # within-row position offset
        pos = (jnp.arange(R, dtype=jnp.float32) * r).reshape(R, 1)
        x_view = x.reshape(B, R, L)
    else:
        R, L = S, C
        ch = jnp.arange(L, dtype=jnp.int32)
        off = jnp.zeros((L,), jnp.float32)
        pos = jnp.arange(R, dtype=jnp.float32).reshape(R, 1)
        x_view = x

    inv_freq = jnp.exp((ch // 2).astype(jnp.float32) * jnp.float32(log_scale))
    phase = (ch & 1).astype(jnp.float32) * jnp.float32(half_pi) + off * inv_freq
    inv_freq = inv_freq.reshape(1, L)
    phase = phase.reshape(1, L)

    bB, tR = _pick_tiles(B, R, L, x.dtype.itemsize, budget_bytes)
    if batch_tile is not None:
        bB = min(max(1, batch_tile), B)
    if row_tile is not None:
        assert row_tile == R or (row_tile % 8 == 0 and row_tile <= R), (
            "row_tile must be a multiple of 8 (or the full row extent)")
        tR = row_tile
    n_b, n_r = pl.cdiv(B, bB), pl.cdiv(R, tR)

    out = pl.pallas_call(
        _summer_kernel,
        out_shape=jax.ShapeDtypeStruct((B, R, L), x.dtype),
        grid=(n_b, n_r),
        in_specs=[
            pl.BlockSpec((tR, 1), lambda b, s: (s, 0)),       # row positions
            pl.BlockSpec((1, L), lambda b, s: (0, 0)),        # inv_freq row
            pl.BlockSpec((1, L), lambda b, s: (0, 0)),        # phase row
            pl.BlockSpec((bB, tR, L), lambda b, s: (b, s, 0)),
        ],
        out_specs=pl.BlockSpec((bB, tR, L), lambda b, s: (b, s, 0)),
        compiler_params=pltpu.CompilerParams(
            # PE is recomputed per step -> no cross-step carry -> both axes
            # are independent and megacore-shardable.
            dimension_semantics=("parallel", "parallel"),
        ),
    )(pos, inv_freq, phase, x_view)

    return out.reshape(B, S, C) if packed else out


def summer_ref(x):
    """Pure-JAX reference mirroring PositionalEncoding1D + Summer."""
    B, S, C = x.shape
    c_even = C + (C & 1)
    pos = jnp.arange(S, dtype=jnp.float32)
    inv_freq = 1.0 / (10000.0 ** (
        jnp.arange(0, c_even, 2, dtype=jnp.float32) / c_even))
    ang = pos[:, None] * inv_freq[None, :]                   # (S, c_even//2)
    emb = jnp.stack((jnp.sin(ang), jnp.cos(ang)), axis=-1).reshape(S, c_even)
    pe = emb[:, :C]
    return x + pe[None].astype(x.dtype)


if __name__ == "__main__":
    key = jax.random.PRNGKey(0)

    # Demo shape: lane-packed path (C=32 -> 4 positions per 128-lane row).
    B, S, C = 2, 8, 32
    x = jax.random.normal(key, (B, S, C), dtype=jnp.float32)
    out = jax.block_until_ready(summer(x))
    assert out.shape == x.shape and out.dtype == x.dtype
    assert jnp.allclose(out, summer_ref(x), atol=1e-4, rtol=1e-4), "f32 mismatch"

    # Multi-tile grid with partial last tiles in both batch and row axes.
    x2 = jax.random.normal(jax.random.PRNGKey(1), (3, 48, 32), dtype=jnp.float32)
    out2 = jax.block_until_ready(summer(x2, row_tile=8, batch_tile=2))
    assert jnp.allclose(out2, summer_ref(x2), atol=1e-4, rtol=1e-4), "tiled mismatch"

    # Non-packable channel count -> natural (B, S, C) layout path.
    x3 = jax.random.normal(jax.random.PRNGKey(2), (2, 16, 48), dtype=jnp.float32)
    out3 = jax.block_until_ready(summer(x3))
    assert jnp.allclose(out3, summer_ref(x3), atol=1e-4, rtol=1e-4), "C=48 mismatch"

    # Odd channel count (frequencies built from channels rounded up to even).
    x4 = jax.random.normal(jax.random.PRNGKey(3), (2, 8, 33), dtype=jnp.float32)
    out4 = jax.block_until_ready(summer(x4))
    assert jnp.allclose(out4, summer_ref(x4), atol=1e-4, rtol=1e-4), "odd-C mismatch"

    # bf16 path (PE cast to bf16 before the add, matching the module).
    x5 = jax.random.normal(jax.random.PRNGKey(4), (2, 32, 64), dtype=jnp.bfloat16)
    out5 = jax.block_until_ready(summer(x5))
    assert out5.dtype == jnp.bfloat16
    assert jnp.allclose(out5.astype(jnp.float32),
                        summer_ref(x5).astype(jnp.float32),
                        atol=5e-2, rtol=5e-2), "bf16 mismatch"

    print("KERNEL_OK")
</pallas_src>

<mosaic_0001>
module attributes {stable_mosaic.version = 11 : i64} {
  func.func @_summer_kernel(%arg0: i32, %arg1: i32, %arg2: memref<2x1xf32, #tpu.memory_space<vmem>>, %arg3: memref<1x128xf32, #tpu.memory_space<vmem>>, %arg4: memref<1x128xf32, #tpu.memory_space<vmem>>, %arg5: memref<2x2x128xf32, #tpu.memory_space<vmem>>, %arg6: memref<2x2x128xf32, #tpu.memory_space<vmem>>) attributes {dimension_semantics = [#tpu.dimension_semantics<parallel>, #tpu.dimension_semantics<parallel>], iteration_bounds = array<i64: 1, 1>, scalar_prefetch = 0 : i64, scratch_operands = 0 : i64, tpu.core_type = #tpu.core_type<tc>, window_params = [{transform_indices = @transform_0, window_bounds = array<i64: 2, 1>}, {pipeline_mode = #tpu.pipeline_mode<synchronous>, transform_indices = @transform_1, window_bounds = array<i64: 1, 128>}, {pipeline_mode = #tpu.pipeline_mode<synchronous>, transform_indices = @transform_2, window_bounds = array<i64: 1, 128>}, {transform_indices = @transform_3, window_bounds = array<i64: 2, 2, 128>}, {transform_indices = @transform_4, window_bounds = array<i64: 2, 2, 128>}]} {
    %c0 = arith.constant 0 : index
    %c0_0 = arith.constant 0 : index
    %0 = vector.load %arg2[%c0, %c0_0] : memref<2x1xf32, #tpu.memory_space<vmem>>, vector<2x1xf32>
    %c0_1 = arith.constant 0 : index
    %c0_2 = arith.constant 0 : index
    %1 = vector.load %arg3[%c0_1, %c0_2] : memref<1x128xf32, #tpu.memory_space<vmem>>, vector<1x128xf32>
    %2 = vector.broadcast %0 : vector<2x1xf32> to vector<2x128xf32>
    %3 = vector.broadcast %1 : vector<1x128xf32> to vector<2x128xf32>
    %4 = arith.mulf %2, %3 : vector<2x128xf32>
    %c0_3 = arith.constant 0 : index
    %c0_4 = arith.constant 0 : index
    %5 = vector.load %arg4[%c0_3, %c0_4] : memref<1x128xf32, #tpu.memory_space<vmem>>, vector<1x128xf32>
    %6 = vector.broadcast %5 : vector<1x128xf32> to vector<2x128xf32>
    %7 = arith.addf %4, %6 : vector<2x128xf32>
    %8 = math.sin %7 : vector<2x128xf32>
    %c0_5 = arith.constant 0 : index
    %c0_6 = arith.constant 0 : index
    %c0_7 = arith.constant 0 : index
    %9 = vector.load %arg5[%c0_5, %c0_6, %c0_7] : memref<2x2x128xf32, #tpu.memory_space<vmem>>, vector<2x2x128xf32>
    %10 = vector.shape_cast %8 : vector<2x128xf32> to vector<1x2x128xf32>
    %11 = vector.broadcast %10 : vector<1x2x128xf32> to vector<2x2x128xf32>
    %12 = arith.addf %9, %11 : vector<2x2x128xf32>
    %c0_8 = arith.constant 0 : index
    %c0_9 = arith.constant 0 : index
    %c0_10 = arith.constant 0 : index
    %13 = vector.load %arg6[%c0_8, %c0_9, %c0_10] : memref<2x2x128xf32, #tpu.memory_space<vmem>>, vector<2x2x128xf32>
    tpu.vector_store %arg6[%c0_8, %c0_9, %c0_10], %12 {strides = array<i32>} : memref<2x2x128xf32, #tpu.memory_space<vmem>>, vector<2x2x128xf32>,
    return
  }
  func.func @transform_0(%arg0: i32, %arg1: i32) -> (i32, i32) {
    %c0_i32 = arith.constant 0 : i32
    %c0_i32_0 = arith.constant 0 : i32
    return %arg1, %c0_i32 : i32, i32
  }
  func.func @transform_1(%arg0: i32, %arg1: i32) -> (i32, i32) {
    %c0_i32 = arith.constant 0 : i32
    %c0_i32_0 = arith.constant 0 : i32
    %c0_i32_1 = arith.constant 0 : i32
    return %c0_i32, %c0_i32_0 : i32, i32
  }
  func.func @transform_2(%arg0: i32, %arg1: i32) -> (i32, i32) {
    %c0_i32 = arith.constant 0 : i32
    %c0_i32_0 = arith.constant 0 : i32
    %c0_i32_1 = arith.constant 0 : i32
    return %c0_i32, %c0_i32_0 : i32, i32
  }
  func.func @transform_3(%arg0: i32, %arg1: i32) -> (i32, i32, i32) {
    %c0_i32 = arith.constant 0 : i32
    %c0_i32_0 = arith.constant 0 : i32
    return %arg0, %arg1, %c0_i32 : i32, i32, i32
  }
  func.func @transform_4(%arg0: i32, %arg1: i32) -> (i32, i32, i32) {
    %c0_i32 = arith.constant 0 : i32
    %c0_i32_0 = arith.constant 0 : i32
    return %arg0, %arg1, %c0_i32 : i32, i32, i32
  }
}

</mosaic_0001>

<bundles_post_ra>
// kernel: tpu_custom_call.1
= control target key start
LH: loop header
LB: loop body
LE: loop exit
PB: predicated region body
PF: predicated region fallthrough
CT: control target
= control target key end

     0   :  { %v213_v1 = vmov 0   ;;  %s287_s0 = inlined_call_operand.vmem [shape: f32[2,1], index: 0, kind: input, shape index: {}]   ;;  %s288_s1 = inlined_call_operand.vmem [shape: f32[1,128], index: 1, kind: input, shape index: {}]   ;;  %s289_s2 = inlined_call_operand.vmem [shape: f32[1,128], index: 2, kind: input, shape index: {}]   ;;  %s290_s3 = inlined_call_operand.vmem [shape: f32[2,2,128], index: 3, kind: input, shape index: {}]   ;;  %s291_s4 = inlined_call_operand.hbm [shape: f32[2,2,128], index: 4, kind: output, shape index: {}]  }
   0x1   :  { %v18_v0 = vld [vmem:[%s287_s0] sm:$0x3]  ;;  %186 = vset.pattern.permute.xlu0 %v213_v1 }
   0x2   :  { %22 = vperm.xlu0 %186, %v18_v0  }
   0x3   :  { %9 = vsyncpa [#allocation3], 0  ;;  %v166_v2 = vld [vmem:[%s288_s1] ss:$0 sm:$0xff]  ;;  %v214_v17 = vmov 683565275  }
   0x4   :  { %v167_v3 = vld [vmem:[%s289_s2] ss:$0 sm:$0xff]  ;;  %v215_v19 = vmov 2475754826   ;;  %v216_v22 = vmov 2131351028  }
   0x5   :  { %v217_v25 = vmov 2102212464   ;;  %v218_v28 = vmov 920167782   ;;  %v219_v31 = vmov 1326507024  }
   0x6   :  { %s220_s22 = smov [#allocation2]  }
   0x7   :  { %s155_s23 = sshll.u32 %s220_s22, 4  ;;  %s156_s23 = int_to_ptr.vmem [resolvable:$true] %s155_s23 }
   0x8   :  { %s191_s24 = scalar_lea.vmem %s156_s23, 64  ;;  %p196_p1 = scmp.lt.s32.totalorder %s156_s23, %s156_s23 }
   0x9   :  { %p192_p0 = scmp.ne.s32.totalorder %s156_s23, %s191_s24  ;;  %p197_p2 = scmp.lt.s32.totalorder %s191_s24, %s191_s24 }
   0xb   :  { %p198_p3 = por %p197_p2, %p196_p1 }
   0xd   :  { %p199_p4 = pnand %p198_p3, %p192_p0 }
  0x7d   :  { %v23_v4 = vpop.permute.xlu0 %22 }
  0x7e   :  { %v31_v5 = vmul.f32 %v166_v2, %v23_v4 }
  0x80   :  { %v257_v6 = vadd.f32 %v167_v3, %v31_v5 }
  0x82   :  { %v43_v7 = vand.u32 2139095040, %v257_v6  ;;  %v40_v11 = vand.u32 2147483647, %v257_v6  ;;  %vm42_vm7 = vcmp.lt.s32.totalorder %v257_v6, 0  ;;  %vm132_vm12 = vweird.f32 %v257_v6 }
  0x84   :  { %v44_v8 = vshrl.u32 %v43_v7, 23  ;;  %v47_v14 = vand.u32 8388607, %v40_v11  ;;  %vm41_vm8 = vcmp.le.f32.partialorder %v40_v11, 0.7853982 }
  0x85   :  { %v144_v11 = vld [vmem:[%s290_s3] sm:$0x3] }
  0x86   :  { %v168_v9 = vadd.s32 4294967169, %v44_v8  ;;  %v48_v33 = vor.u32 8388608, %v47_v14 }
  0x88   :  { %v50_v10 = vadd.s32 1, %v168_v9  ;;  %v88_v47 = vshll.u32 %v48_v33, 8 }
  0x8a   :  { %vm51_vm0 = vcmp.gt.s32.totalorder %v50_v10, 0 }
  0x8b   :  { %v52_v12 = vsel %vm51_vm0, %v50_v10, 0 }
  0x8c   :  { %v54_v13 = vand.u32 31, %v52_v12  ;;  %v53_v16 = vshrl.u32 %v52_v12, 5 }
  0x8e   :  { %v55_v15 = vsub.s32 32, %v54_v13  ;;  %v57_v18 = vshll.u32 %v214_v17, %v54_v13  ;;  %v60_v20 = vshll.u32 %v215_v19, %v54_v13  ;;  %v63_v24 = vshll.u32 %v216_v22, %v54_v13 }
  0x8f   :  { %v66_v27 = vshll.u32 %v217_v25, %v54_v13  ;;  %v69_v30 = vshll.u32 %v218_v28, %v54_v13  ;;  %vm72_vm1 = vcmp.lt.s32.totalorder %v53_v16, 1  ;;  %vm75_vm2 = vcmp.lt.s32.totalorder %v53_v16, 4 }
  0x90   :  { %v58_v21 = vshrl.u32 %v215_v19, %v55_v15  ;;  %v61_v23 = vshrl.u32 %v216_v22, %v55_v15  ;;  %v64_v26 = vshrl.u32 %v217_v25, %v55_v15  ;;  %v67_v29 = vshrl.u32 %v218_v28, %v55_v15 }
  0x91   :  { %v70_v32 = vshrl.u32 %v219_v31, %v55_v15  ;;  %v56_v42 = vshrl.u32 %v214_v17, %v55_v15  ;;  %vm74_vm3 = vcmp.lt.s32.totalorder %v53_v16, 3  ;;  %vm73_vm4 = vcmp.lt.s32.totalorder %v53_v16, 2 }
  0x92   :  { %v59_v34 = vor.u32 %v58_v21, %v57_v18  ;;  %v62_v35 = vor.u32 %v61_v23, %v60_v20  ;;  %v65_v36 = vor.u32 %v64_v26, %v63_v24  ;;  %v68_v37 = vor.u32 %v67_v29, %v66_v27 }
  0x93   :  { %v71_v38 = vor.u32 %v70_v32, %v69_v30 }
  0x94   :  { %v77_v39 = vsel %vm75_vm2, %v65_v36, 2102212464  ;;  %v80_v40 = vsel %vm72_vm1, %v59_v34, %v62_v35  ;;  %v84_v41 = vsel %vm72_vm1, %v62_v35, %v65_v36  ;;  %v81_v43 = vsel %vm75_vm2, %v68_v37, 920167782 }
  0x95   :  { %v85_v44 = vsel %vm75_vm2, %v71_v38, 1326507024  ;;  %v82_v45 = vsel %vm74_vm3, %v65_v36, %v81_v43  ;;  %v76_v48 = vsel %vm72_vm1, %v56_v42, %v59_v34  ;;  %v78_v49 = vsel %vm74_vm3, %v62_v35, %v77_v39  ;;  %v145_v34 = vld [vmem:[%s290_s3 + $0x2] sm:$0x3] }
  0x96   :  { %v86_v46 = vsel %vm74_vm3, %v68_v37, %v85_v44  ;;  %v83_v50 = vsel %vm73_vm4, %v80_v40, %v82_v45  ;;  %v79_v56 = vsel %vm73_vm4, %v76_v48, %v78_v49 }
  0x97   :  { %v87_v51 = vsel %vm73_vm4, %v84_v41, %v86_v46  ;;  %v266_v54 = vmul.u32.u64.low %v88_v47, %v83_v50  ;;  %v267_v55 = vmul.u32.u64.high %v88_v47, %v83_v50, %v266_v54  ;;  %v95_v58 = vmul.u32 %v88_v47, %v79_v56 }
  0x98   :  { %v263_v52 = vmul.u32.u64.low %v88_v47, %v87_v51  ;;  %v264_v53 = vmul.u32.u64.high %v88_v47, %v87_v51, %v263_v52 }
  0x99   :  { %v98_v57 = vadd.s32 1, %v267_v55 }
  0x9a   :  { %vm97_vm5 = vc.u32 %v264_v53, %v266_v54  ;;  %v96_v7 = vadd.s32 %v266_v54, %v264_v53 }
  0x9b   :  { %v99_v59 = vsel %vm97_vm5, %v98_v57, %v267_v55 }
  0x9c   :  { %v100_v60 = vadd.s32 %v99_v59, %v95_v58 }
  0x9e   :  { %v101_v61 = vadd.s32 536870912, %v100_v60 }
  0xa0   :  { %v102_v62 = vshrl.u32 %v101_v61, 30 }
  0xa2   :  { %v103_v63 = vshll.u32 %v102_v62, 30  ;;  %v126_v21 = vsub.s32 4, %v102_v62 }
  0xa4   :  { %v104_v0 = vsub.s32 %v100_v60, %v103_v63  ;;  %v127_v24 = vsel %vm42_vm7, %v126_v21, %v102_v62 }
  0xa5   :  { %v129_v25 = vsel %vm41_vm8, 0, %v127_v24 }
  0xa6   :  { %v106_v1 = vsub.s32 0, %v104_v0  ;;  %v133_v26 = vadd.s32 3, %v129_v25 }
  0xa8   :  { %v169_v2 = vmin.u32 %v106_v1, %v104_v0  ;;  %v134_v27 = vand.u32 3, %v133_v26 }
  0xaa   :  { %v108_v3 = vclz %v169_v2  ;;  %vm139_vm9 = vcmp.eq.s32.totalorder %v134_v27, 2  ;;  %vm136_vm10 = vcmp.eq.s32.totalorder %v134_v27, 0  ;;  %vm135_vm11 = vcmp.lt.s32.totalorder %v134_v27, 2 }
  0xac   :  { %v170_v4 = vadd.s32 4294967294, %v108_v3 }
  0xae   :  { %vm171_vm6 = vcmp.lt.s32.totalorder %v170_v4, 0 }
  0xaf   :  { %v111_v5 = vsel %vm171_vm6, 0, %v170_v4 }
  0xb0   :  { %v112_v8 = vsub.s32 32, %v111_v5  ;;  %v116_v9 = vsub.s32 4294967266, %v111_v5  ;;  %v113_v10 = vshll.u32 %v104_v0, %v111_v5 }
  0xb2   :  { %v114_v12 = vshrl.u32 %v96_v7, %v112_v8  ;;  %v117_v13 = vadd.s32 127, %v116_v9 }
  0xb4   :  { %v115_v14 = vor.u32 %v114_v12, %v113_v10  ;;  %v118_v15 = vshll.u32 %v117_v13, 23 }
  0xb6   :  { %v119_v16 = vor.u32 4788187, %v118_v15  ;;  %v122_v18 = vcvt.s32.f32 %v115_v14 }
  0xb8   :  { %v120_v17 = vand.u32 2147483647, %v119_v16 }
  0xba   :  { %v123_v19 = vmul.f32 %v122_v18, %v120_v17 }
  0xbc   :  { %v124_v20 = vxor.u32 2147483648, %v123_v19 }
  0xbe   :  { %v125_v22 = vsel %vm42_vm7, %v124_v20, %v123_v19 }
  0xbf   :  { %v128_v23 = vsel %vm41_vm8, %v257_v6, %v125_v22 }
  0xc0   :  { %187 = vcosq.f32 %v128_v23 }
  0xc1   :  { %189 = vsinq.f32 %v128_v23 }
  0xcd   :  { %v188_v28 = vpop.eup %187 }
  0xce   :  { %v190_v29 = vpop.eup %189  ;;  %v140_v30 = vxor.u32 2147483648, %v188_v28 }
  0xcf   :  { %v137_v31 = vxor.u32 2147483648, %v190_v29 }
  0xd0   :  { %v141_v32 = vsel %vm139_vm9, %v140_v30, %v190_v29 }
  0xd1   :  { %v138_v33 = vsel %vm136_vm10, %v188_v28, %v137_v31 }
  0xd2   :  { %v142_v35 = vsel %vm135_vm11, %v138_v33, %v141_v32 }
  0xd3   :  { %v143_v36 = vsel %vm132_vm12, nan, %v142_v35 }
  0xd4   :  { %v146_v37 = vadd.f32 %v144_v11, %v143_v36  ;;  %v147_v38 = vadd.f32 %v145_v34, %v143_v36 }
  0xd6   :  { %148 = vst [vmem:[#allocation2] sm:$0x3] %v146_v37  ;;  %149 = vst [vmem:[#allocation2 + $0x2] sm:$0x3] %v147_v38 }
  0xd7   :  { %202 = shalt.err (!%p199_p4)
}
  0xd8   :  { %s221_s25 = smov 32   ;;  %s222_s3 = smov 2  }
  0xd9   :  { %161 = dma.vmem_to_hbm [thread:$0]  %s156_s23, 64, %s291_s4, [#allocation3], %s221_s25, %s221_s25, %s222_s3  }
  0xda   :  { %211 = dma.done.wait [#allocation3], 64  }
  0xdb   :  { %212 = vsyncadd [#allocation3], 4294967232 }
  0xdc   :  { %165 = vsyncpa [#allocation3], 1 }

</bundles_post_ra>
